<compile_context>
chip_gen: v7x
topology: tpu7x:2x2x1
jax: 0.10.0
libtpu: 0.0.40
codegen_flags: <defaults>
</compile_context>

<pallas_src>
import functools

import jax
import jax.numpy as jnp
from jax.experimental import pallas as pl
from jax.experimental.pallas import tpu as pltpu

NEG_SLOPE = 0.01   # nn.LeakyReLU default
LN_EPS = 1e-5      # nn.LayerNorm default
LANE = 128
SUBLANE = 8


def _round_up(x, m):
    return (x + m - 1) // m * m


def _leaky_relu(x):
    return jnp.where(x > 0, x, NEG_SLOPE * x)


def _layer_norm_onepass(x, gamma, beta):
    # Single data pass: sum(x) and sum(x*x) are independent cross-lane
    # reductions (overlap on the 2 XLUs); variance clamped at 0 to guard
    # against cancellation. Matches torch's biased-variance LayerNorm.
    n = x.shape[-1]
    s1 = jnp.sum(x, axis=-1, keepdims=True)
    s2 = jnp.sum(x * x, axis=-1, keepdims=True)
    mean = s1 * (1.0 / n)
    var = jnp.maximum(s2 * (1.0 / n) - mean * mean, 0.0)
    inv = jax.lax.rsqrt(var + LN_EPS)
    return (x - mean) * inv * gamma + beta


def _mlp_head_kernel(
    x_ref,
    w1_ref, b1_ref,
    w2_ref, b2_ref, g2_ref, be2_ref,
    w3_ref, b3_ref, g3_ref, be3_ref,
    w4_ref, b4_ref,
    o_ref,
):
    bf16 = jnp.bfloat16
    x = x_ref[...]                                       # bf16 (bt, in_p)

    # Layer 1: Linear + LeakyReLU   (bf16 x bf16 MXU, f32 accumulation)
    h = jnp.dot(x, w1_ref[...], preferred_element_type=jnp.float32) + b1_ref[...]
    h = _leaky_relu(h)

    # Layer 2: Linear + LeakyReLU + LayerNorm
    h = jnp.dot(h.astype(bf16), w2_ref[...],
                preferred_element_type=jnp.float32) + b2_ref[...]
    h = _layer_norm_onepass(_leaky_relu(h), g2_ref[...], be2_ref[...])

    # Layer 3: Linear + LeakyReLU + LayerNorm
    h = jnp.dot(h.astype(bf16), w3_ref[...],
                preferred_element_type=jnp.float32) + b3_ref[...]
    h = _layer_norm_onepass(_leaky_relu(h), g3_ref[...], be3_ref[...])

    # Output layer: Linear (f32 result, lane-dense padded store)
    out = jnp.dot(h.astype(bf16), w4_ref[...],
                  preferred_element_type=jnp.float32) + b4_ref[...]
    o_ref[...] = out.astype(o_ref.dtype)


@functools.partial(jax.jit, static_argnames=("batch_tile",))
def expanding_mlp_head(x, params, batch_tile=None):
    """params: dict of f32 weights/biases/layernorm params (see init_params)."""
    B, in_dim = x.shape
    hidden = params["w1"].shape[1]
    out_dim = params["w4"].shape[1]

    in_p = _round_up(in_dim, LANE)    # lane-dense input
    out_p = _round_up(out_dim, LANE)  # lane-dense (unmasked) output stores

    if batch_tile is None:
        # Explicit tile so large batches pipeline and shard across v7x cores.
        batch_tile = min(256, _round_up(B, SUBLANE))
    batch_tile = _round_up(batch_tile, SUBLANE)
    B_p = _round_up(B, batch_tile)

    # --- prepare operands: zero-pad to lane-dense shapes, bf16 weights ------
    # (In real use, do this weight preprocessing once, not per call.)
    bf16 = jnp.bfloat16
    x_p = jnp.zeros((B_p, in_p), bf16).at[:B, :in_dim].set(x.astype(bf16))

    w1 = jnp.zeros((in_p, hidden), bf16).at[:in_dim, :].set(
        params["w1"].astype(bf16))
    w2 = params["w2"].astype(bf16)
    w3 = params["w3"].astype(bf16)
    w4 = jnp.zeros((hidden * 4, out_p), bf16).at[:, :out_dim].set(
        params["w4"].astype(bf16))

    row = lambda v: v.reshape(1, -1).astype(jnp.float32)   # 2-D lane-dense row
    b1 = row(params["b1"])
    b2, g2, be2 = row(params["b2"]), row(params["g2"]), row(params["be2"])
    b3, g3, be3 = row(params["b3"]), row(params["g3"]), row(params["be3"])
    b4 = jnp.zeros((1, out_p), jnp.float32).at[:, :out_dim].set(row(params["b4"]))

    ordered = [w1, b1, w2, b2, g2, be2, w3, b3, g3, be3, w4, b4]

    def resident(arr):
        # Constant index_map => same block every grid step; single-buffer so
        # the (dominant) weight footprint is not doubled (v7x: 64 MiB VMEM).
        nd = arr.ndim
        return pl.BlockSpec(arr.shape, lambda i: (0,) * nd,
                            pipeline_mode=pl.Buffered(1))

    grid = (B_p // batch_tile,)
    in_specs = [pl.BlockSpec((batch_tile, in_p), lambda i: (i, 0))]
    in_specs += [resident(a) for a in ordered]
    out_spec = pl.BlockSpec((batch_tile, out_p), lambda i: (i, 0))

    # --- VMEM budget + cost estimate (static Python ints) -------------------
    def nbytes(a):
        return a.size * jnp.dtype(a.dtype).itemsize

    resident_bytes = sum(nbytes(a) for a in ordered)
    tile_bytes = 2 * (batch_tile * in_p * 2) + 2 * (batch_tile * out_p * 4)
    act_bytes = 4 * batch_tile * (hidden + 2 * hidden + 2 * 4 * hidden)
    vmem_limit = int(min(64 * 2**20,                      # safe on v7x too
                         max(32 * 2**20,
                             2 * (resident_bytes + tile_bytes + act_bytes)
                             + (4 << 20))))

    flops = 2 * B_p * (in_p * hidden + 2 * hidden * hidden
                       + 8 * hidden * hidden + 4 * hidden * out_p)
    bytes_accessed = resident_bytes + nbytes(x_p) + B_p * out_p * 4
    cost = pl.CostEstimate(flops=flops, transcendentals=2 * B_p,
                           bytes_accessed=bytes_accessed)

    out = pl.pallas_call(
        _mlp_head_kernel,
        out_shape=jax.ShapeDtypeStruct((B_p, out_p), jnp.float32),
        grid_spec=pltpu.PrefetchScalarGridSpec(
            num_scalar_prefetch=0,
            grid=grid,
            in_specs=in_specs,
            out_specs=out_spec,
        ),
        compiler_params=pltpu.CompilerParams(
            dimension_semantics=("parallel",),
            vmem_limit_bytes=vmem_limit,
        ),
        cost_estimate=cost,
    )(x_p, *ordered)

    return out[:B, :out_dim]


def init_params(key, in_dim, out_dim, hidden_dim):
    """Deterministic synthetic init matching the layer shapes of the module."""
    dims = [
        (in_dim, hidden_dim),               # layer 1
        (hidden_dim, hidden_dim * 2),       # layer 2 (+ LayerNorm(2H))
        (hidden_dim * 2, hidden_dim * 4),   # layer 3 (+ LayerNorm(4H))
        (hidden_dim * 4, out_dim),          # output layer
    ]
    keys = jax.random.split(key, 16)
    p = {}
    k = iter(keys)
    for idx, (din, dout) in enumerate(dims, start=1):
        scale = 1.0 / jnp.sqrt(jnp.float32(din))
        p[f"w{idx}"] = jax.random.uniform(
            next(k), (din, dout), jnp.float32, -scale, scale)
        p[f"b{idx}"] = jax.random.uniform(
            next(k), (dout,), jnp.float32, -scale, scale)
    # LayerNorm params (torch default init: weight=1, bias=0)
    p["g2"] = jnp.ones((hidden_dim * 2,), jnp.float32)
    p["be2"] = jnp.zeros((hidden_dim * 2,), jnp.float32)
    p["g3"] = jnp.ones((hidden_dim * 4,), jnp.float32)
    p["be3"] = jnp.zeros((hidden_dim * 4,), jnp.float32)
    return p


def reference(x, p):
    def ln(h, g, b):
        mean = jnp.mean(h, axis=-1, keepdims=True)
        var = jnp.mean(jnp.square(h - mean), axis=-1, keepdims=True)
        return (h - mean) * jax.lax.rsqrt(var + LN_EPS) * g + b

    h = _leaky_relu(x @ p["w1"] + p["b1"])
    h = ln(_leaky_relu(h @ p["w2"] + p["b2"]), p["g2"], p["be2"])
    h = ln(_leaky_relu(h @ p["w3"] + p["b3"]), p["g3"], p["be3"])
    return h @ p["w4"] + p["b4"]


if __name__ == "__main__":
    key = jax.random.PRNGKey(0)
    k_x, k_p = jax.random.split(key)

    batch, in_dim, out_dim, hidden_dim = 16, 16, 8, 32
    x = jax.random.normal(k_x, (batch, in_dim), jnp.float32)
    params = init_params(k_p, in_dim, out_dim, hidden_dim)

    # batch_tile=8 -> 2 grid steps: exercises the pipelined / multi-step path.
    out = expanding_mlp_head(x, params, batch_tile=8)
    out = jax.block_until_ready(out)
    assert out.shape == (batch, out_dim)

    ref = reference(x, params)
    err = float(jnp.max(jnp.abs(out - ref)))
    scale = float(jnp.max(jnp.abs(ref))) + 1e-6
    # bf16 MXU operands with f32 accumulation vs f32 reference: a few % max.
    assert err <= 5e-2 * scale, f"mismatch vs reference: err={err}, scale={scale}"

    print("KERNEL_OK")
</pallas_src>

<mosaic_0001>
module attributes {stable_mosaic.version = 11 : i64} {
  func.func @_mlp_head_kernel(%arg0: i32, %arg1: memref<8x128xbf16, #tpu.memory_space<vmem>>, %arg2: memref<128x32xbf16, #tpu.memory_space<vmem>>, %arg3: memref<1x32xf32, #tpu.memory_space<vmem>>, %arg4: memref<32x64xbf16, #tpu.memory_space<vmem>>, %arg5: memref<1x64xf32, #tpu.memory_space<vmem>>, %arg6: memref<1x64xf32, #tpu.memory_space<vmem>>, %arg7: memref<1x64xf32, #tpu.memory_space<vmem>>, %arg8: memref<64x128xbf16, #tpu.memory_space<vmem>>, %arg9: memref<1x128xf32, #tpu.memory_space<vmem>>, %arg10: memref<1x128xf32, #tpu.memory_space<vmem>>, %arg11: memref<1x128xf32, #tpu.memory_space<vmem>>, %arg12: memref<128x128xbf16, #tpu.memory_space<vmem>>, %arg13: memref<1x128xf32, #tpu.memory_space<vmem>>, %arg14: memref<8x128xf32, #tpu.memory_space<vmem>>) attributes {dimension_semantics = [#tpu.dimension_semantics<parallel>], iteration_bounds = array<i64: 2>, scalar_prefetch = 0 : i64, scratch_operands = 0 : i64, tpu.core_type = #tpu.core_type<tc>, window_params = [{transform_indices = @transform_0, window_bounds = array<i64: 8, 128>}, {pipeline_mode = #tpu.pipeline_mode<synchronous>, transform_indices = @transform_1, window_bounds = array<i64: 128, 32>}, {pipeline_mode = #tpu.pipeline_mode<synchronous>, transform_indices = @transform_2, window_bounds = array<i64: 1, 32>}, {pipeline_mode = #tpu.pipeline_mode<synchronous>, transform_indices = @transform_3, window_bounds = array<i64: 32, 64>}, {pipeline_mode = #tpu.pipeline_mode<synchronous>, transform_indices = @transform_4, window_bounds = array<i64: 1, 64>}, {pipeline_mode = #tpu.pipeline_mode<synchronous>, transform_indices = @transform_5, window_bounds = array<i64: 1, 64>}, {pipeline_mode = #tpu.pipeline_mode<synchronous>, transform_indices = @transform_6, window_bounds = array<i64: 1, 64>}, {pipeline_mode = #tpu.pipeline_mode<synchronous>, transform_indices = @transform_7, window_bounds = array<i64: 64, 128>}, {pipeline_mode = #tpu.pipeline_mode<synchronous>, transform_indices = @transform_8, window_bounds = array<i64: 1, 128>}, {pipeline_mode = #tpu.pipeline_mode<synchronous>, transform_indices = @transform_9, window_bounds = array<i64: 1, 128>}, {pipeline_mode = #tpu.pipeline_mode<synchronous>, transform_indices = @transform_10, window_bounds = array<i64: 1, 128>}, {pipeline_mode = #tpu.pipeline_mode<synchronous>, transform_indices = @transform_11, window_bounds = array<i64: 128, 128>}, {pipeline_mode = #tpu.pipeline_mode<synchronous>, transform_indices = @transform_12, window_bounds = array<i64: 1, 128>}, {transform_indices = @transform_13, window_bounds = array<i64: 8, 128>}]} {
    %c0 = arith.constant 0 : index
    %c0_0 = arith.constant 0 : index
    %0 = vector.load %arg1[%c0, %c0_0] : memref<8x128xbf16, #tpu.memory_space<vmem>>, vector<8x128xbf16>
    %c0_1 = arith.constant 0 : index
    %c0_2 = arith.constant 0 : index
    %1 = vector.load %arg2[%c0_1, %c0_2] : memref<128x32xbf16, #tpu.memory_space<vmem>>, vector<128x32xbf16>
    %cst = arith.constant dense<0.000000e+00> : vector<8x32xf32>
    %2 = tpu.matmul %0, %1, %cst {dimension_numbers = #tpu.dot_dimension_numbers<[1], [0], [0], [1], [0, 0, 1, 1], [], []>} : vector<8x128xbf16>, vector<128x32xbf16>, vector<8x32xf32> -> vector<8x32xf32>
    %c0_3 = arith.constant 0 : index
    %c0_4 = arith.constant 0 : index
    %3 = vector.load %arg3[%c0_3, %c0_4] : memref<1x32xf32, #tpu.memory_space<vmem>>, vector<1x32xf32>
    %4 = vector.broadcast %3 : vector<1x32xf32> to vector<8x32xf32>
    %5 = arith.addf %2, %4 : vector<8x32xf32>
    %cst_5 = arith.constant 0.000000e+00 : f32
    %6 = vector.broadcast %cst_5 : f32 to vector<8x32xf32>
    %7 = arith.cmpf ogt, %5, %6 : vector<8x32xf32>
    %cst_6 = arith.constant 0.00999999977 : f32
    %8 = vector.broadcast %cst_6 : f32 to vector<8x32xf32>
    %9 = arith.mulf %8, %5 : vector<8x32xf32>
    %10 = arith.select %7, %5, %9 : vector<8x32xi1>, vector<8x32xf32>
    %11 = arith.truncf %10 : vector<8x32xf32> to vector<8x32xbf16>
    %c0_7 = arith.constant 0 : index
    %c0_8 = arith.constant 0 : index
    %12 = vector.load %arg4[%c0_7, %c0_8] : memref<32x64xbf16, #tpu.memory_space<vmem>>, vector<32x64xbf16>
    %cst_9 = arith.constant dense<0.000000e+00> : vector<8x64xf32>
    %13 = tpu.matmul %11, %12, %cst_9 {dimension_numbers = #tpu.dot_dimension_numbers<[1], [0], [0], [1], [0, 0, 1, 1], [], []>} : vector<8x32xbf16>, vector<32x64xbf16>, vector<8x64xf32> -> vector<8x64xf32>
    %c0_10 = arith.constant 0 : index
    %c0_11 = arith.constant 0 : index
    %14 = vector.load %arg5[%c0_10, %c0_11] : memref<1x64xf32, #tpu.memory_space<vmem>>, vector<1x64xf32>
    %15 = vector.broadcast %14 : vector<1x64xf32> to vector<8x64xf32>
    %16 = arith.addf %13, %15 : vector<8x64xf32>
    %cst_12 = arith.constant 0.000000e+00 : f32
    %17 = vector.broadcast %cst_12 : f32 to vector<8x64xf32>
    %18 = arith.cmpf ogt, %16, %17 : vector<8x64xf32>
    %cst_13 = arith.constant 0.00999999977 : f32
    %19 = vector.broadcast %cst_13 : f32 to vector<8x64xf32>
    %20 = arith.mulf %19, %16 : vector<8x64xf32>
    %21 = arith.select %18, %16, %20 : vector<8x64xi1>, vector<8x64xf32>
    %c0_14 = arith.constant 0 : index
    %c0_15 = arith.constant 0 : index
    %22 = vector.load %arg6[%c0_14, %c0_15] : memref<1x64xf32, #tpu.memory_space<vmem>>, vector<1x64xf32>
    %c0_16 = arith.constant 0 : index
    %c0_17 = arith.constant 0 : index
    %23 = vector.load %arg7[%c0_16, %c0_17] : memref<1x64xf32, #tpu.memory_space<vmem>>, vector<1x64xf32>
    %cst_18 = arith.constant dense<0.000000e+00> : vector<8xf32>
    %24 = vector.multi_reduction <add>, %21, %cst_18 [1] : vector<8x64xf32> to vector<8xf32>
    %25 = vector.shape_cast %24 : vector<8xf32> to vector<8x1xf32>
    %26 = arith.mulf %21, %21 : vector<8x64xf32>
    %cst_19 = arith.constant dense<0.000000e+00> : vector<8xf32>
    %27 = vector.multi_reduction <add>, %26, %cst_19 [1] : vector<8x64xf32> to vector<8xf32>
    %28 = vector.shape_cast %27 : vector<8xf32> to vector<8x1xf32>
    %cst_20 = arith.constant 1.562500e-02 : f32
    %29 = vector.broadcast %cst_20 : f32 to vector<8x1xf32>
    %30 = arith.mulf %25, %29 : vector<8x1xf32>
    %cst_21 = arith.constant 1.562500e-02 : f32
    %31 = vector.broadcast %cst_21 : f32 to vector<8x1xf32>
    %32 = arith.mulf %28, %31 : vector<8x1xf32>
    %33 = arith.mulf %30, %30 : vector<8x1xf32>
    %34 = arith.subf %32, %33 : vector<8x1xf32>
    %cst_22 = arith.constant 0.000000e+00 : f32
    %35 = vector.broadcast %cst_22 : f32 to vector<8x1xf32>
    %36 = arith.maximumf %34, %35 : vector<8x1xf32>
    %cst_23 = arith.constant 9.99999974E-6 : f32
    %37 = vector.broadcast %cst_23 : f32 to vector<8x1xf32>
    %38 = arith.addf %36, %37 : vector<8x1xf32>
    %39 = math.rsqrt %38 : vector<8x1xf32>
    %40 = vector.broadcast %30 : vector<8x1xf32> to vector<8x64xf32>
    %41 = arith.subf %21, %40 : vector<8x64xf32>
    %42 = vector.broadcast %39 : vector<8x1xf32> to vector<8x64xf32>
    %43 = arith.mulf %41, %42 : vector<8x64xf32>
    %44 = vector.broadcast %22 : vector<1x64xf32> to vector<8x64xf32>
    %45 = arith.mulf %43, %44 : vector<8x64xf32>
    %46 = vector.broadcast %23 : vector<1x64xf32> to vector<8x64xf32>
    %47 = arith.addf %45, %46 : vector<8x64xf32>
    %48 = arith.truncf %47 : vector<8x64xf32> to vector<8x64xbf16>
    %c0_24 = arith.constant 0 : index
    %c0_25 = arith.constant 0 : index
    %49 = vector.load %arg8[%c0_24, %c0_25] : memref<64x128xbf16, #tpu.memory_space<vmem>>, vector<64x128xbf16>
    %cst_26 = arith.constant dense<0.000000e+00> : vector<8x128xf32>
    %50 = tpu.matmul %48, %49, %cst_26 {dimension_numbers = #tpu.dot_dimension_numbers<[1], [0], [0], [1], [0, 0, 1, 1], [], []>} : vector<8x64xbf16>, vector<64x128xbf16>, vector<8x128xf32> -> vector<8x128xf32>
    %c0_27 = arith.constant 0 : index
    %c0_28 = arith.constant 0 : index
    %51 = vector.load %arg9[%c0_27, %c0_28] : memref<1x128xf32, #tpu.memory_space<vmem>>, vector<1x128xf32>
    %52 = vector.broadcast %51 : vector<1x128xf32> to vector<8x128xf32>
    %53 = arith.addf %50, %52 : vector<8x128xf32>
    %cst_29 = arith.constant 0.000000e+00 : f32
    %54 = vector.broadcast %cst_29 : f32 to vector<8x128xf32>
    %55 = arith.cmpf ogt, %53, %54 : vector<8x128xf32>
    %cst_30 = arith.constant 0.00999999977 : f32
    %56 = vector.broadcast %cst_30 : f32 to vector<8x128xf32>
    %57 = arith.mulf %56, %53 : vector<8x128xf32>
    %58 = arith.select %55, %53, %57 : vector<8x128xi1>, vector<8x128xf32>
    %c0_31 = arith.constant 0 : index
    %c0_32 = arith.constant 0 : index
    %59 = vector.load %arg10[%c0_31, %c0_32] : memref<1x128xf32, #tpu.memory_space<vmem>>, vector<1x128xf32>
    %c0_33 = arith.constant 0 : index
    %c0_34 = arith.constant 0 : index
    %60 = vector.load %arg11[%c0_33, %c0_34] : memref<1x128xf32, #tpu.memory_space<vmem>>, vector<1x128xf32>
    %cst_35 = arith.constant dense<0.000000e+00> : vector<8xf32>
    %61 = vector.multi_reduction <add>, %58, %cst_35 [1] : vector<8x128xf32> to vector<8xf32>
    %62 = vector.shape_cast %61 : vector<8xf32> to vector<8x1xf32>
    %63 = arith.mulf %58, %58 : vector<8x128xf32>
    %cst_36 = arith.constant dense<0.000000e+00> : vector<8xf32>
    %64 = vector.multi_reduction <add>, %63, %cst_36 [1] : vector<8x128xf32> to vector<8xf32>
    %65 = vector.shape_cast %64 : vector<8xf32> to vector<8x1xf32>
    %cst_37 = arith.constant 7.812500e-03 : f32
    %66 = vector.broadcast %cst_37 : f32 to vector<8x1xf32>
    %67 = arith.mulf %62, %66 : vector<8x1xf32>
    %cst_38 = arith.constant 7.812500e-03 : f32
    %68 = vector.broadcast %cst_38 : f32 to vector<8x1xf32>
    %69 = arith.mulf %65, %68 : vector<8x1xf32>
    %70 = arith.mulf %67, %67 : vector<8x1xf32>
    %71 = arith.subf %69, %70 : vector<8x1xf32>
    %cst_39 = arith.constant 0.000000e+00 : f32
    %72 = vector.broadcast %cst_39 : f32 to vector<8x1xf32>
    %73 = arith.maximumf %71, %72 : vector<8x1xf32>
    %cst_40 = arith.constant 9.99999974E-6 : f32
    %74 = vector.broadcast %cst_40 : f32 to vector<8x1xf32>
    %75 = arith.addf %73, %74 : vector<8x1xf32>
    %76 = math.rsqrt %75 : vector<8x1xf32>
    %77 = vector.broadcast %67 : vector<8x1xf32> to vector<8x128xf32>
    %78 = arith.subf %58, %77 : vector<8x128xf32>
    %79 = vector.broadcast %76 : vector<8x1xf32> to vector<8x128xf32>
    %80 = arith.mulf %78, %79 : vector<8x128xf32>
    %81 = vector.broadcast %59 : vector<1x128xf32> to vector<8x128xf32>
    %82 = arith.mulf %80, %81 : vector<8x128xf32>
    %83 = vector.broadcast %60 : vector<1x128xf32> to vector<8x128xf32>
    %84 = arith.addf %82, %83 : vector<8x128xf32>
    %85 = arith.truncf %84 : vector<8x128xf32> to vector<8x128xbf16>
    %c0_41 = arith.constant 0 : index
    %c0_42 = arith.constant 0 : index
    %86 = vector.load %arg12[%c0_41, %c0_42] : memref<128x128xbf16, #tpu.memory_space<vmem>>, vector<128x128xbf16>
    %cst_43 = arith.constant dense<0.000000e+00> : vector<8x128xf32>
    %87 = tpu.matmul %85, %86, %cst_43 {dimension_numbers = #tpu.dot_dimension_numbers<[1], [0], [0], [1], [0, 0, 1, 1], [], []>} : vector<8x128xbf16>, vector<128x128xbf16>, vector<8x128xf32> -> vector<8x128xf32>
    %c0_44 = arith.constant 0 : index
    %c0_45 = arith.constant 0 : index
    %88 = vector.load %arg13[%c0_44, %c0_45] : memref<1x128xf32, #tpu.memory_space<vmem>>, vector<1x128xf32>
    %89 = vector.broadcast %88 : vector<1x128xf32> to vector<8x128xf32>
    %90 = arith.addf %87, %89 : vector<8x128xf32>
    %c0_46 = arith.constant 0 : index
    %c0_47 = arith.constant 0 : index
    %91 = vector.load %arg14[%c0_46, %c0_47] : memref<8x128xf32, #tpu.memory_space<vmem>>, vector<8x128xf32>
    tpu.vector_store %arg14[%c0_46, %c0_47], %90 {strides = array<i32>} : memref<8x128xf32, #tpu.memory_space<vmem>>, vector<8x128xf32>,
    return
  }
  func.func @transform_0(%arg0: i32) -> (i32, i32) {
    %c0_i32 = arith.constant 0 : i32
    %c0_i32_0 = arith.constant 0 : i32
    return %arg0, %c0_i32 : i32, i32
  }
  func.func @transform_1(%arg0: i32) -> (i32, i32) {
    %c0_i32 = arith.constant 0 : i32
    %c0_i32_0 = arith.constant 0 : i32
    %c0_i32_1 = arith.constant 0 : i32
    return %c0_i32, %c0_i32_0 : i32, i32
  }
  func.func @transform_2(%arg0: i32) -> (i32, i32) {
    %c0_i32 = arith.constant 0 : i32
    %c0_i32_0 = arith.constant 0 : i32
    %c0_i32_1 = arith.constant 0 : i32
    return %c0_i32, %c0_i32_0 : i32, i32
  }
  func.func @transform_3(%arg0: i32) -> (i32, i32) {
    %c0_i32 = arith.constant 0 : i32
    %c0_i32_0 = arith.constant 0 : i32
    %c0_i32_1 = arith.constant 0 : i32
    return %c0_i32, %c0_i32_0 : i32, i32
  }
  func.func @transform_4(%arg0: i32) -> (i32, i32) {
    %c0_i32 = arith.constant 0 : i32
    %c0_i32_0 = arith.constant 0 : i32
    %c0_i32_1 = arith.constant 0 : i32
    return %c0_i32, %c0_i32_0 : i32, i32
  }
  func.func @transform_5(%arg0: i32) -> (i32, i32) {
    %c0_i32 = arith.constant 0 : i32
    %c0_i32_0 = arith.constant 0 : i32
    %c0_i32_1 = arith.constant 0 : i32
    return %c0_i32, %c0_i32_0 : i32, i32
  }
  func.func @transform_6(%arg0: i32) -> (i32, i32) {
    %c0_i32 = arith.constant 0 : i32
    %c0_i32_0 = arith.constant 0 : i32
    %c0_i32_1 = arith.constant 0 : i32
    return %c0_i32, %c0_i32_0 : i32, i32
  }
  func.func @transform_7(%arg0: i32) -> (i32, i32) {
    %c0_i32 = arith.constant 0 : i32
    %c0_i32_0 = arith.constant 0 : i32
    %c0_i32_1 = arith.constant 0 : i32
    return %c0_i32, %c0_i32_0 : i32, i32
  }
  func.func @transform_8(%arg0: i32) -> (i32, i32) {
    %c0_i32 = arith.constant 0 : i32
    %c0_i32_0 = arith.constant 0 : i32
    %c0_i32_1 = arith.constant 0 : i32
    return %c0_i32, %c0_i32_0 : i32, i32
  }
  func.func @transform_9(%arg0: i32) -> (i32, i32) {
    %c0_i32 = arith.constant 0 : i32
    %c0_i32_0 = arith.constant 0 : i32
    %c0_i32_1 = arith.constant 0 : i32
    return %c0_i32, %c0_i32_0 : i32, i32
  }
  func.func @transform_10(%arg0: i32) -> (i32, i32) {
    %c0_i32 = arith.constant 0 : i32
    %c0_i32_0 = arith.constant 0 : i32
    %c0_i32_1 = arith.constant 0 : i32
    return %c0_i32, %c0_i32_0 : i32, i32
  }
  func.func @transform_11(%arg0: i32) -> (i32, i32) {
    %c0_i32 = arith.constant 0 : i32
    %c0_i32_0 = arith.constant 0 : i32
    %c0_i32_1 = arith.constant 0 : i32
    return %c0_i32, %c0_i32_0 : i32, i32
  }
  func.func @transform_12(%arg0: i32) -> (i32, i32) {
    %c0_i32 = arith.constant 0 : i32
    %c0_i32_0 = arith.constant 0 : i32
    %c0_i32_1 = arith.constant 0 : i32
    return %c0_i32, %c0_i32_0 : i32, i32
  }
  func.func @transform_13(%arg0: i32) -> (i32, i32) {
    %c0_i32 = arith.constant 0 : i32
    %c0_i32_0 = arith.constant 0 : i32
    return %arg0, %c0_i32 : i32, i32
  }
}

</mosaic_0001>

<bundles_post_ra>
// kernel: expanding_mlp_head.1
= control target key start
LH: loop header
LB: loop body
LE: loop exit
PB: predicated region body
PF: predicated region fallthrough
CT: control target
= control target key end

     0   :  { %s1181_s25 = smov 0   ;;  %s1325_s0 = inlined_call_operand.vmem [shape: bf16[16,128], index: 0, kind: input, shape index: {}]   ;;  %s1326_s1 = inlined_call_operand.vmem [shape: bf16[128,32], index: 1, kind: input, shape index: {}]   ;;  %s1327_s2 = inlined_call_operand.vmem [shape: f32[1,32], index: 2, kind: input, shape index: {}]   ;;  %s1328_s3 = inlined_call_operand.vmem [shape: bf16[32,64], index: 3, kind: input, shape index: {}]   ;;  %s1329_s4 = inlined_call_operand.vmem [shape: f32[1,64], index: 4, kind: input, shape index: {}]   ;;  %s1330_s5 = inlined_call_operand.vmem [shape: f32[1,64], index: 5, kind: input, shape index: {}]   ;;  %s1331_s6 = inlined_call_operand.vmem [shape: f32[1,64], index: 6, kind: input, shape index: {}]   ;;  %s1332_s7 = inlined_call_operand.vmem [shape: bf16[64,128], index: 7, kind: input, shape index: {}]   ;;  %s1333_s8 = inlined_call_operand.vmem [shape: f32[1,128], index: 8, kind: input, shape index: {}]   ;;  %s1334_s9 = inlined_call_operand.vmem [shape: f32[1,128], index: 9, kind: input, shape index: {}]   ;;  %s1335_s10 = inlined_call_operand.vmem [shape: f32[1,128], index: 10, kind: input, shape index: {}]   ;;  %s1336_s11 = inlined_call_operand.vmem [shape: bf16[128,128], index: 11, kind: input, shape index: {}]   ;;  %s1337_s12 = inlined_call_operand.vmem [shape: f32[1,128], index: 12, kind: input, shape index: {}]   ;;  %s1338_s13 = inlined_call_operand.vmem [shape: f32[16,128], index: 13, kind: output, shape index: {}]  }
   0x1 LB: > { %s938_s26 = sadd.s32 4294967295, %s1107_s25   ;;  %p942_p0 = scmp.ge.s32.totalorder %s1107_s25, 1  ;;  %s1107_s25 = sphi %s1181_s25, %s23_s25  }
   0x2   : > { %p386_p1 = scmp.lt.s32.totalorder %s1107_s25, 3 }
   0x4   : > { %p387_p2 = pnand %p942_p0, %p386_p1 }
   0x5   : > { %v1075_v0 = vld [vmem:[%s1326_s1] sm:$0xff] (!%p387_p2)   ;;  %v1109_v1 = vmov (!%p387_p2), 0.0   ;;  %v1076_v2 = vld [vmem:[%s1326_s1 + $0x8] sm:$0xff] (!%p387_p2)   ;;  %vm1110_vm0 = vmmov (!%p387_p2), 0   ;;  %v1077_v3 = vld [vmem:[%s1326_s1 + $0x10] sm:$0xff] (!%p387_p2)   ;;  %p428_p3 = scmp.lt.s32.totalorder (!%p387_p2), %s938_s26, 1 }
   0x6   : > { %390 = sbr.rel (%p387_p2) target bundleno = 1253 (0x4e5), region = 72  ;;  %1005 = vmatprep.subr.bf16.mxu0 (!%p387_p2), %v1109_v1  ;;  %1033 = vmatprep.subr.bf16.mxu1 (!%p387_p2), %v1109_v1  ;;  %v1078_v4 = vld [vmem:[%s1326_s1 + $0x18] sm:$0xff] (!%p387_p2)   ;;  %v1079_v5 = vld [vmem:[%s1326_s1 + $0x20] sm:$0xff] (!%p387_p2)   ;;  %v1080_v6 = vld [vmem:[%s1326_s1 + $0x28] sm:$0xff] (!%p387_p2)   ;;  %vm576_vm2 = vcmask (!%p387_p2), 261120   ;;  %vm625_vm4 = vcmask (!%p387_p2), 523264  }
   0x7   : > { %1006 = vmatpush3.bf16.msra.mxu0 (!%p387_p2), %v1075_v0  ;;  %1021 = vmatprep.mubr.msk.bf16.mxu0 (!%p387_p2), %vm1110_vm0, %v1109_v1  ;;  %v1081_v7 = vld [vmem:[%s1326_s1 + $0x30] sm:$0xff] (!%p387_p2)   ;;  %v1082_v8 = vld [vmem:[%s1326_s1 + $0x38] sm:$0xff] (!%p387_p2)   ;;  %v1083_v10 = vld [vmem:[%s1328_s3] sm:$0xff] (!%p387_p2)  }
   0x8   : > { %1007 = vmatprep.subr.bf16.mxu0 (!%p387_p2), %v1109_v1  ;;  %1041 = vmatprep.mubr.msk.bf16.mxu1 (!%p387_p2), %vm1110_vm0, %v1109_v1  ;;  %v1084_v11 = vld [vmem:[%s1328_s3 + $0x8] sm:$0xff] (!%p387_p2)   ;;  %v945_v12 = vld [vmem:[%s1327_s2] ss:$0 sm:$0xff] (!%p387_p2)  ;;  %v1087_v34 = vld [vmem:[%s1332_s7 + $0x10] sm:$0xff] (!%p387_p2)  }
   0x9   : > { %v954_v21 = vld [vmem:[%s1329_s4] ss:$0 sm:$0xff] (!%p387_p2)  ;;  %v1086_v33 = vld [vmem:[%s1332_s7 + $0x8] sm:$0xff] (!%p387_p2)   ;;  %v1088_v35 = vld [vmem:[%s1332_s7 + $0x18] sm:$0xff] (!%p387_p2)  }
   0xa   : > { %v1085_v32 = vld [vmem:[%s1332_s7] sm:$0xff] (!%p387_p2)   ;;  %v1090_v62 = vld [vmem:[%s1336_s11 + $0x8] sm:$0xff] (!%p387_p2)   ;;  %v1091_v63 = vld [vmem:[%s1336_s11 + $0x10] sm:$0xff] (!%p387_p2)  }
   0xb   : > { %1008 = vmatpush3.bf16.msra.mxu0 (!%p387_p2), %v1076_v2  ;;  %1034 = vmatpush3.bf16.msra.mxu1 (!%p387_p2), %v1085_v32  ;;  %v958_v46 = vld [vmem:[%s1330_s5] ss:$0 sm:$0xff] (!%p387_p2)  ;;  %v1092_v0 = vld [vmem:[%s1336_s11 + $0x18] sm:$0xff] (!%p387_p2)  }
   0xc   : > { %1009 = vmatprep.subr.bf16.mxu0 (!%p387_p2), %v1109_v1  ;;  %1035 = vmatprep.subr.bf16.mxu1 (!%p387_p2), %v1109_v1  ;;  %v959_v48 = vld [vmem:[%s1331_s6] ss:$0 sm:$0xff] (!%p387_p2) }
   0xd   : > { %s1340_s26 = smov (!%p428_p3, %s938_s26), 1  ;;  %v960_v52 = vld [vmem:[%s1333_s8] ss:$0 sm:$0xff] }
   0xe   : > { %s943_s24 = sshll.u32 %s1340_s26, 2  ;;  %v1089_v61 = vld [vmem:[%s1336_s11] sm:$0xff]   ;;  %s944_s29 = sshll.u32 %s1340_s26, 3 }
   0xf   : > { %1010 = vmatpush3.bf16.msra.mxu0 %v1077_v3  ;;  %s431_s14 = scalar_lea.vmem %s1325_s0, %s943_s24  ;;  %1036 = vmatpush3.bf16.msra.mxu1 %v1086_v33  ;;  %v1093_v2 = vld [vmem:[%s1336_s11 + $0x20] sm:$0xff]   ;;  %v1094_v3 = vld [vmem:[%s1336_s11 + $0x28] sm:$0xff]   ;;  %s435_s17 = scalar_lea.vmem %s1338_s13, %s944_s29 }
  0x10   : > { %1011 = vmatprep.subr.bf16.mxu0 %v1109_v1  ;;  %v437_v9 = vld [vmem:[%s431_s14] sm:$0xf]  ;;  %1037 = vmatprep.subr.bf16.mxu1 %v1109_v1 }
  0x13   : > { %1012 = vmatpush3.bf16.msra.mxu0 %v1078_v4  ;;  %1038 = vmatpush3.bf16.msra.mxu1 %v1087_v34  ;;  %v1095_v4 = vld [vmem:[%s1336_s11 + $0x30] sm:$0xff]  }
  0x14   : > { %1013 = vmatprep.subr.bf16.mxu0 %v1109_v1  ;;  %1039 = vmatprep.subr.bf16.mxu1 %v1109_v1 }
  0x17   : > { %1014 = vmatpush3.bf16.msra.mxu0 %v1079_v5  ;;  %1040 = vmatpush3.bf16.msra.mxu1 %v1088_v35  ;;  %v1096_v5 = vld [vmem:[%s1336_s11 + $0x38] sm:$0xff]  }
  0x18   : > { %1015 = vmatprep.subr.bf16.mxu0 %v1109_v1  ;;  %1045 = vmatprep.subr.bf16.mxu1 %v1109_v1 }
  0x1b   : > { %1016 = vmatpush3.bf16.msra.mxu0 %v1080_v6 }
  0x1c   : > { %1017 = vmatprep.subr.bf16.mxu0 %v1109_v1 }
  0x1f   : > { %1018 = vmatpush3.bf16.msra.mxu0 %v1081_v7 }
  0x20   : > { %1019 = vmatprep.subr.bf16.mxu0 %v1109_v1 }
  0x23   : > { %1020 = vmatpush3.bf16.msra.mxu0 %v1082_v8 }
  0x24   : > { %1025 = vmatprep.subr.bf16.mxu0 %v1109_v1 }
  0x26   : > { %1022 = vmatmul.mubr.bf16.vlgmr.msra.gmra.mrb[0].mxu0 %v437_v9 }
  0x27   : > { %1029 = vmatprep.mubr.msk.bf16.mxu0 %vm1110_vm0, %v1109_v1  ;;  %1026 = vmatpush3.bf16.msra.mxu0 %v1083_v10 }
  0x28   : > { %1027 = vmatprep.subr.bf16.mxu0 %v1109_v1 }
  0x2b   : > { %1028 = vmatpush3.bf16.msra.mxu0 %v1084_v11 }
  0xf9   : > { %v543_v13 = vpop.f32.mrb[0].mxu0 }
  0xfa   : > { %v544_v14 = vadd.f32 %v945_v12, %v543_v13  ;;  %v1023_v15 = vpop.f32.mrb[1].mxu0 }
  0xfb   : > { %v546_v16 = vpop.f32.mrb[2].mxu0 }
  0xfc   : > { %vm549_vm1 = vcmp.gt.f32.partialorder %v544_v14, 0.0  ;;  %v550_v17 = vmul.f32 0.01, %v544_v14  ;;  %v1024_v18 = vpop.f32.mrb[3].mxu0  ;;  %v966_v16 = vld [vmem:[%s1334_s9] ss:$0 sm:$0xff] }
  0xfe   : > { %v551_v19 = vsel %vm549_vm1, %v544_v14, %v550_v17 }
  0xff   : > { %v552_v20 = vpack.c.bf16 %v551_v19, %v551_v19 }
 0x101   : > { %1030 = vmatmul.mubr.msk.bf16.vlgmr.msra.gmra.mrb[4].mxu0 %vm576_vm2, %v552_v20 }
 0x1d4   : > { %v614_v22 = vpop.f32.mrb[4].mxu0 }
 0x1d5   : > { %v615_v23 = vadd.f32 %v954_v21, %v614_v22  ;;  %v1031_v24 = vpop.f32.mrb[5].mxu0  ;;  %v968_v21 = vld [vmem:[%s1337_s12] ss:$0 sm:$0xff] }
 0x1d6   : > { %v617_v25 = vpop.f32.mrb[6].mxu0 }
 0x1d7   : > { %v621_v26 = vmul.f32 0.01, %v615_v23  ;;  %v1032_v27 = vpop.f32.mrb[7].mxu0  ;;  %vm620_vm3 = vcmp.gt.f32.partialorder %v615_v23, 0.0 }
 0x1d9   : > { %v622_v28 = vsel %vm620_vm3, %v615_v23, %v621_v26 }
 0x1da   : > { %v626_v29 = vsel %vm625_vm4, %v622_v28, 0.0  ;;  %v629_v30 = vmul.f32 %v622_v28, %v622_v28 }
 0x1db   : > { %627 = vadd.xlane.f32.xlu0 %v626_v29 }
 0x1dc   : > { %v630_v31 = vsel %vm625_vm4, %v629_v30, 0.0 }
 0x1df   : > { %631 = vadd.xlane.f32.xlu0 %v630_v31 }
 0x268   : > { %v628_v36 = vpop.xlane.xlu0 %627 }
 0x269   : > { %v633_v37 = vmul.f32 0.015625, %v628_v36 }
 0x26b   : > { %v635_v39 = vmul.f32 %v633_v37, %v633_v37  ;;  %v640_v44 = vsub.f32 %v622_v28, %v633_v37 }
 0x26c   : > { %v632_v38 = vpop.xlane.xlu0 %631 }
 0x26d   : > { %v634_v40 = vmul.f32 0.015625, %v632_v38 }
 0x26f   : > { %v636_v41 = vsub.f32 %v634_v40, %v635_v39 }
 0x271   : > { %v637_v42 = vmax.f32 %v636_v41, 0.0 }
 0x273   : > { %v638_v43 = vadd.f32 1e-05, %v637_v42 }
 0x275   : > { %1097 = vrsqrt.f32 %v638_v43 }
 0x27f   : > { %v1098_v45 = vpop.eup %1097 }
 0x280   : > { %v641_v47 = vmul.f32 %v1098_v45, %v640_v44 }
 0x282   : > { %v648_v49 = vmul.f32 %v958_v46, %v641_v47 }
 0x284   : > { %v655_v50 = vadd.f32 %v959_v48, %v648_v49 }
 0x286   : > { %v656_v51 = vpack.c.bf16 %v655_v50, %v655_v50 }
 0x288   : > { %1042 = vmatmul.mubr.msk.bf16.vlgmr.msra.gmra.mrb[0].mxu1 %vm625_vm4, %v656_v51 }
 0x289   : > { %1061 = vmatprep.mubr.msk.bf16.mxu1 %vm1110_vm0, %v1109_v1  ;;  %1046 = vmatpush3.bf16.msra.mxu1 %v1089_v61 }
 0x28a   : > { %1047 = vmatprep.subr.bf16.mxu1 %v1109_v1 }
 0x28d   : > { %1048 = vmatpush3.bf16.msra.mxu1 %v1090_v62 }
 0x28e   : > { %1049 = vmatprep.subr.bf16.mxu1 %v1109_v1 }
 0x291   : > { %1050 = vmatpush3.bf16.msra.mxu1 %v1091_v63 }
 0x292   : > { %1051 = vmatprep.subr.bf16.mxu1 %v1109_v1 }
 0x295   : > { %1052 = vmatpush3.bf16.msra.mxu1 %v1092_v0 }
 0x296   : > { %1053 = vmatprep.subr.bf16.mxu1 %v1109_v1 }
 0x299   : > { %1054 = vmatpush3.bf16.msra.mxu1 %v1093_v2 }
 0x29a   : > { %1055 = vmatprep.subr.bf16.mxu1 %v1109_v1 }
 0x29d   : > { %1056 = vmatpush3.bf16.msra.mxu1 %v1094_v3 }
 0x29e   : > { %1057 = vmatprep.subr.bf16.mxu1 %v1109_v1 }
 0x2a1   : > { %1058 = vmatpush3.bf16.msra.mxu1 %v1095_v4 }
 0x2a2   : > { %1059 = vmatprep.subr.bf16.mxu1 %v1109_v1  ;;  %v967_v1 = vld [vmem:[%s1335_s10] ss:$0 sm:$0xff] }
 0x2a5   : > { %1060 = vmatpush3.bf16.msra.mxu1 %v1096_v5 }
 0x35b   : > { %v733_v53 = vpop.f32.mrb[0].mxu1 }
 0x35c   : > { %v734_v54 = vadd.f32 %v960_v52, %v733_v53  ;;  %v1043_v55 = vpop.f32.mrb[1].mxu1 }
 0x35d   : > { %v736_v56 = vpop.f32.mrb[2].mxu1 }
 0x35e   : > { %v740_v57 = vmul.f32 0.01, %v734_v54  ;;  %v1044_v58 = vpop.f32.mrb[3].mxu1  ;;  %vm739_vm5 = vcmp.gt.f32.partialorder %v734_v54, 0.0 }
 0x360   : > { %v741_v59 = vsel %vm739_vm5, %v734_v54, %v740_v57 }
 0x361   : > { %744 = vadd.xlane.f32.xlu1 %v741_v59  ;;  %v746_v60 = vmul.f32 %v741_v59, %v741_v59 }
 0x365   : > { %747 = vadd.xlane.f32.xlu1 %v746_v60 }
 0x3ee   : > { %v745_v6 = vpop.xlane.xlu1 %744 }
 0x3ef   : > { %v749_v7 = vmul.f32 0.0078125, %v745_v6 }
 0x3f1   : > { %v751_v9 = vmul.f32 %v749_v7, %v749_v7  ;;  %v756_v14 = vsub.f32 %v741_v59, %v749_v7 }
 0x3f2   : > { %v748_v8 = vpop.xlane.xlu1 %747 }
 0x3f3   : > { %v750_v10 = vmul.f32 0.0078125, %v748_v8 }
 0x3f5   : > { %v752_v11 = vsub.f32 %v750_v10, %v751_v9 }
 0x3f7   : > { %v753_v12 = vmax.f32 %v752_v11, 0.0 }
 0x3f9   : > { %v754_v13 = vadd.f32 1e-05, %v753_v12 }
 0x3fb   : > { %1099 = vrsqrt.f32 %v754_v13 }
 0x405   : > { %v1100_v15 = vpop.eup %1099 }
 0x406   : > { %v757_v17 = vmul.f32 %v1100_v15, %v756_v14 }
 0x408   : > { %v764_v18 = vmul.f32 %v966_v16, %v757_v17 }
 0x40a   : > { %v771_v19 = vadd.f32 %v967_v1, %v764_v18 }
 0x40c   : > { %v772_v20 = vpack.c.bf16 %v771_v19, %v771_v19 }
 0x40e   : > { %1062 = vmatmul.mubr.bf16.vlgmr.msra.gmra.mrb[4].mxu1 %v772_v20 }
 0x4e1   : > { %v878_v22 = vpop.f32.mrb[4].mxu1 }
 0x4e2   : > { %v879_v23 = vadd.f32 %v968_v21, %v878_v22  ;;  %v1063_v24 = vpop.f32.mrb[5].mxu1 }
 0x4e3   : > { %v881_v25 = vpop.f32.mrb[6].mxu1 }
 0x4e4   : > { %884 = vst [vmem:[%s435_s17] sm:$0xff] %v879_v23  ;;  %v1064_v26 = vpop.f32.mrb[7].mxu1 }
 0x4e5 PF: > { %s23_s25 = sadd.s32 1, %s1107_s25  }
 0x4e6   : > { %p20_p4 = scmp.ge.s32.totalorder %s23_s25, 4  }
 0x4e8   :  { %22 = sbr.rel (!%p20_p4) target bundleno = 1 (0x1), region = 102 }

</bundles_post_ra>
